<compile_context>
chip_gen: v5e
topology: v5e:2x2
jax: 0.10.0
libtpu: 0.0.40
codegen_flags: <defaults>
</compile_context>

<pallas_src>
import jax
import jax.numpy as jnp
from jax.experimental import pallas as pl
from jax.experimental.pallas import tpu as pltpu  # noqa: F401  (TPU backend / params if needed)


def conv1x1_bias_relu_kernel(x_ref, w_ref, b_ref, o_ref):
    """x_ref: (N*Cin, L), w_ref: (Cout, Cin), b_ref: (Cout, 1), o_ref: (N*Cout, L).

    Computes, per batch element n:  o[n] = relu(w @ x[n] + b), with the K=Cin
    contraction statically unrolled as rank-1 VPU FMAs and the batch loop
    statically unrolled (shapes are static, so n/cin/cout are Python ints).
    """
    x = x_ref[...]                      # (N*Cin, L)   lane-dense, one contiguous load
    w = w_ref[...]                      # (Cout, Cin)
    b = b_ref[...]                      # (Cout, 1)    lane-broadcast bias

    cout, cin = w.shape
    n = x.shape[0] // cin

    # canvas.Placeholder() with no assigned kernel -> identity, nothing to do.

    for ni in range(n):                 # static unroll over batch (N == 2)
        base = ni * cin
        # Fuse bias into the accumulator init: saves one (Cout, L) add pass.
        acc = b + w[:, 0:1] * x[base:base + 1, :]            # (Cout, L)
        for ci in range(1, cin):                              # static unroll, Cin == 3
            acc = acc + w[:, ci:ci + 1] * x[base + ci:base + ci + 1, :]
        o_ref[ni * cout:(ni + 1) * cout, :] = jnp.maximum(acc, 0.0).astype(o_ref.dtype)


def example_model_forward(x_ncl, conv_w, conv_b):
    """x_ncl: (N, 3, L) float32; conv_w: (32, 3, 1); conv_b: (32,).

    Returns (N, 32, L) float32 = ReLU(Conv1d(3, 32, 1)(x)).
    """
    n, cin, l = x_ncl.shape
    cout = conv_w.shape[0]

    x_flat = x_ncl.reshape(n * cin, l)   # free contiguous reshape -> one DMA in
    w_mat = conv_w.reshape(cout, cin)    # (Cout, Cin) 1x1-conv weight as matrix
    b_col = conv_b.reshape(cout, 1)      # (Cout, 1) -> broadcasts along lanes

    flops = 2 * n * cout * cin * l + n * cout * l                  # FMAs + relu
    bytes_accessed = 4 * (n * cin * l + cout * cin + cout + n * cout * l)

    out_flat = pl.pallas_call(
        conv1x1_bias_relu_kernel,
        out_shape=jax.ShapeDtypeStruct((n * cout, l), jnp.float32),
        # No grid: single invocation, full-array VMEM blocks, one contiguous
        # DMA in / out.  The whole problem (~73 KB) fits trivially in VMEM.
        cost_estimate=pl.CostEstimate(
            flops=flops, transcendentals=0, bytes_accessed=bytes_accessed),
    )(x_flat, w_mat, b_col)

    return out_flat.reshape(n, cout, l)  # free contiguous reshape to (N, Cout, L)


def reference_forward(x_ncl, conv_w, conv_b):
    """Pure-JAX reference of the same forward pass."""
    cout, cin = conv_w.shape[0], conv_w.shape[1]
    w = conv_w.reshape(cout, cin)
    y = jnp.einsum("oc,ncl->nol", w, x_ncl) + conv_b[None, :, None]
    return jnp.maximum(y, 0.0)


if __name__ == "__main__":
    key = jax.random.PRNGKey(0)
    k_x, k_w, k_b = jax.random.split(key, 3)

    N, CIN, L = 2, 3, 256          # single spatial dim (Conv1d input)
    COUT = 32

    x = jax.random.normal(k_x, (N, CIN, L), dtype=jnp.float32)
    conv_w = jax.random.normal(k_w, (COUT, CIN, 1), dtype=jnp.float32) * 0.1
    conv_b = jax.random.normal(k_b, (COUT,), dtype=jnp.float32) * 0.1

    out = example_model_forward(x, conv_w, conv_b)
    out = jax.block_until_ready(out)

    ref = reference_forward(x, conv_w, conv_b)
    assert out.shape == (N, COUT, L), out.shape
    assert jnp.allclose(out, ref, atol=1e-4, rtol=1e-4), "mismatch vs reference"

    print("KERNEL_OK")
</pallas_src>

<mosaic_0001>
module attributes {stable_mosaic.version = 11 : i64} {
  func.func @conv1x1_bias_relu_kernel(%arg0: memref<6x256xf32, #tpu.memory_space<vmem>>, %arg1: memref<32x3xf32, #tpu.memory_space<vmem>>, %arg2: memref<32x1xf32, #tpu.memory_space<vmem>>, %arg3: memref<64x256xf32, #tpu.memory_space<vmem>>) attributes {dimension_semantics = [], scalar_prefetch = 0 : i64, scratch_operands = 0 : i64, tpu.core_type = #tpu.core_type<tc>} {
    %c0 = arith.constant 0 : index
    %c0_0 = arith.constant 0 : index
    %0 = vector.load %arg0[%c0, %c0_0] : memref<6x256xf32, #tpu.memory_space<vmem>>, vector<6x256xf32>
    %c0_1 = arith.constant 0 : index
    %c0_2 = arith.constant 0 : index
    %1 = vector.load %arg1[%c0_1, %c0_2] : memref<32x3xf32, #tpu.memory_space<vmem>>, vector<32x3xf32>
    %c0_3 = arith.constant 0 : index
    %c0_4 = arith.constant 0 : index
    %2 = vector.load %arg2[%c0_3, %c0_4] : memref<32x1xf32, #tpu.memory_space<vmem>>, vector<32x1xf32>
    %3 = vector.extract_strided_slice %1 {offsets = [0, 0], sizes = [32, 1], strides = [1, 1]} : vector<32x3xf32> to vector<32x1xf32>
    %4 = vector.extract_strided_slice %0 {offsets = [0, 0], sizes = [1, 256], strides = [1, 1]} : vector<6x256xf32> to vector<1x256xf32>
    %5 = vector.broadcast %3 : vector<32x1xf32> to vector<32x256xf32>
    %6 = vector.broadcast %4 : vector<1x256xf32> to vector<32x256xf32>
    %7 = arith.mulf %5, %6 : vector<32x256xf32>
    %8 = vector.broadcast %2 : vector<32x1xf32> to vector<32x256xf32>
    %9 = arith.addf %8, %7 : vector<32x256xf32>
    %10 = vector.extract_strided_slice %1 {offsets = [0, 1], sizes = [32, 1], strides = [1, 1]} : vector<32x3xf32> to vector<32x1xf32>
    %11 = vector.extract_strided_slice %0 {offsets = [1, 0], sizes = [1, 256], strides = [1, 1]} : vector<6x256xf32> to vector<1x256xf32>
    %12 = vector.broadcast %10 : vector<32x1xf32> to vector<32x256xf32>
    %13 = vector.broadcast %11 : vector<1x256xf32> to vector<32x256xf32>
    %14 = arith.mulf %12, %13 : vector<32x256xf32>
    %15 = arith.addf %9, %14 : vector<32x256xf32>
    %16 = vector.extract_strided_slice %1 {offsets = [0, 2], sizes = [32, 1], strides = [1, 1]} : vector<32x3xf32> to vector<32x1xf32>
    %17 = vector.extract_strided_slice %0 {offsets = [2, 0], sizes = [1, 256], strides = [1, 1]} : vector<6x256xf32> to vector<1x256xf32>
    %18 = vector.broadcast %16 : vector<32x1xf32> to vector<32x256xf32>
    %19 = vector.broadcast %17 : vector<1x256xf32> to vector<32x256xf32>
    %20 = arith.mulf %18, %19 : vector<32x256xf32>
    %21 = arith.addf %15, %20 : vector<32x256xf32>
    %cst = arith.constant 0.000000e+00 : f32
    %22 = vector.broadcast %cst : f32 to vector<32x256xf32>
    %23 = arith.maximumf %21, %22 : vector<32x256xf32>
    %c0_5 = arith.constant 0 : index
    %c0_6 = arith.constant 0 : index
    %24 = vector.load %arg3[%c0_5, %c0_6] : memref<64x256xf32, #tpu.memory_space<vmem>>, vector<32x256xf32>
    tpu.vector_store %arg3[%c0_5, %c0_6], %23 {strides = array<i32>} : memref<64x256xf32, #tpu.memory_space<vmem>>, vector<32x256xf32>,
    %25 = vector.extract_strided_slice %1 {offsets = [0, 0], sizes = [32, 1], strides = [1, 1]} : vector<32x3xf32> to vector<32x1xf32>
    %26 = vector.extract_strided_slice %0 {offsets = [3, 0], sizes = [1, 256], strides = [1, 1]} : vector<6x256xf32> to vector<1x256xf32>
    %27 = vector.broadcast %25 : vector<32x1xf32> to vector<32x256xf32>
    %28 = vector.broadcast %26 : vector<1x256xf32> to vector<32x256xf32>
    %29 = arith.mulf %27, %28 : vector<32x256xf32>
    %30 = vector.broadcast %2 : vector<32x1xf32> to vector<32x256xf32>
    %31 = arith.addf %30, %29 : vector<32x256xf32>
    %32 = vector.extract_strided_slice %1 {offsets = [0, 1], sizes = [32, 1], strides = [1, 1]} : vector<32x3xf32> to vector<32x1xf32>
    %33 = vector.extract_strided_slice %0 {offsets = [4, 0], sizes = [1, 256], strides = [1, 1]} : vector<6x256xf32> to vector<1x256xf32>
    %34 = vector.broadcast %32 : vector<32x1xf32> to vector<32x256xf32>
    %35 = vector.broadcast %33 : vector<1x256xf32> to vector<32x256xf32>
    %36 = arith.mulf %34, %35 : vector<32x256xf32>
    %37 = arith.addf %31, %36 : vector<32x256xf32>
    %38 = vector.extract_strided_slice %1 {offsets = [0, 2], sizes = [32, 1], strides = [1, 1]} : vector<32x3xf32> to vector<32x1xf32>
    %39 = vector.extract_strided_slice %0 {offsets = [5, 0], sizes = [1, 256], strides = [1, 1]} : vector<6x256xf32> to vector<1x256xf32>
    %40 = vector.broadcast %38 : vector<32x1xf32> to vector<32x256xf32>
    %41 = vector.broadcast %39 : vector<1x256xf32> to vector<32x256xf32>
    %42 = arith.mulf %40, %41 : vector<32x256xf32>
    %43 = arith.addf %37, %42 : vector<32x256xf32>
    %cst_7 = arith.constant 0.000000e+00 : f32
    %44 = vector.broadcast %cst_7 : f32 to vector<32x256xf32>
    %45 = arith.maximumf %43, %44 : vector<32x256xf32>
    %c32 = arith.constant 32 : index
    %c0_8 = arith.constant 0 : index
    %46 = vector.load %arg3[%c32, %c0_8] : memref<64x256xf32, #tpu.memory_space<vmem>>, vector<32x256xf32>
    tpu.vector_store %arg3[%c32, %c0_8], %45 {strides = array<i32>} : memref<64x256xf32, #tpu.memory_space<vmem>>, vector<32x256xf32>,
    return
  }
}

</mosaic_0001>

<bundles_post_ra>
// kernel: tpu_custom_call.1
= control target key start
LH: loop header
LB: loop body
LE: loop exit
PB: predicated region body
PF: predicated region fallthrough
CT: control target
= control target key end

     0   :  { %v296_v2 = vmov 0   ;;  %s436_s0 = inlined_call_operand.vmem [shape: f32[6,256], index: 0, kind: input, shape index: {}]   ;;  %s437_s1 = inlined_call_operand.vmem [shape: f32[32,3], index: 1, kind: input, shape index: {}]   ;;  %s438_s2 = inlined_call_operand.vmem [shape: f32[32,1], index: 2, kind: input, shape index: {}]   ;;  %s439_s3 = inlined_call_operand.hbm [shape: f32[64,256], index: 3, kind: output, shape index: {}]  }
   0x1   :  { %v19_v0 = vld [vmem:[%s437_s1 + $0x10] sm:$0xff]  ;;  %v17_v1 = vld [vmem:[%s437_s1] sm:$0xff]  ;;  %262 = vset.pattern.permute.xlu1 %v296_v2  ;;  %261 = vset.pattern.permute.xlu0 %v296_v2 }
   0x2   :  { %v21_v3 = vld [vmem:[%s438_s2] sm:$0xff]  ;;  %37 = vperm.xlu1 %262, %v19_v0   ;;  %27 = vperm.xlu0 %261, %v17_v1  }
   0x3   :  { %8 = vsyncpa [#allocation3], 0  ;;  %263 = vset.pattern.permute.xlu2 %v296_v2  ;;  %v20_v4 = vld [vmem:[%s437_s1 + $0x18] sm:$0xff]  ;;  %v18_v5 = vld [vmem:[%s437_s1 + $0x8] sm:$0xff]  ;;  %v297_v9 = vmov 1   ;;  %v298_v10 = vmov 2  }
   0x4   :  { %57 = vperm.xlu2 %263, %v21_v3   ;;  %v22_v6 = vld [vmem:[%s438_s2 + $0x8] sm:$0xff]  ;;  %v24_v7 = vld [vmem:[%s438_s2 + $0x18] sm:$0xff]  ;;  %v23_v8 = vld [vmem:[%s438_s2 + $0x10] sm:$0xff]  ;;  %s243_s6 = sshll.u32 %s439_s3, 4  ;;  %s300_s7 = smov 256   ;;  %s244_s6 = int_to_ptr.hbm [resolvable:$true] %s243_s6 }
   0x5   :  { %v15_v18 = vld [vmem:[%s436_s0] sm:$0x3f]  ;;  %v16_v19 = vld [vmem:[%s436_s0 + $0x8] sm:$0x3f]  ;;  %s299_s0 = smov [#allocation2]   ;;  %s301_s8 = smov 16  }
   0x6   :  { %v45_v20 = vperm.slane %v15_v18, 0  ;;  %v46_v21 = vperm.slane %v16_v19, 0  ;;  %v167_v22 = vperm.slane %v15_v18, 3  ;;  %v354_v23 = vperm.slane %v15_v18, 1  ;;  %s241_s30 = sshll.u32 %s299_s0, 4  ;;  %s242_s30 = int_to_ptr.vmem [resolvable:$true] %s241_s30 }
   0x7   :  { %v168_v24 = vperm.slane %v16_v19, 3  ;;  %v356_v25 = vperm.slane %v16_v19, 1  ;;  %v358_v26 = vperm.slane %v15_v18, 4  ;;  %v360_v27 = vperm.slane %v16_v19, 4 }
   0x8   :  { %v365_v36 = vperm.slane %v15_v18, 2  ;;  %v367_v37 = vperm.slane %v16_v19, 2  ;;  %v372_v41 = vperm.slane %v15_v18, 5  ;;  %v374_v45 = vperm.slane %v16_v19, 5 }
   0xa   :  { %42 = vperm.xlu1 %262, %v20_v4   ;;  %32 = vperm.xlu0 %261, %v18_v5  }
   0xc   :  { %62 = vperm.xlu2 %263, %v22_v6  }
  0x12   :  { %72 = vperm.xlu1 %262, %v24_v7   ;;  %67 = vperm.xlu0 %261, %v23_v8  }
  0x14   :  { %264 = vset.pattern.permute.xlu2 %v297_v9 }
  0x15   :  { %84 = vperm.xlu2 %264, %v17_v1  }
  0x1a   :  { %266 = vset.pattern.permute.xlu1 %v297_v9  ;;  %265 = vset.pattern.permute.xlu0 %v297_v9 }
  0x1b   :  { %92 = vperm.xlu1 %266, %v19_v0   ;;  %88 = vperm.xlu0 %265, %v18_v5  }
  0x1d   :  { %96 = vperm.xlu2 %264, %v20_v4  }
  0x23   :  { %267 = vset.pattern.permute.xlu1 %v298_v10  ;;  %269 = vset.pattern.permute.xlu0 %v298_v10 }
  0x24   :  { %118 = vperm.xlu1 %267, %v17_v1   ;;  %126 = vperm.xlu0 %269, %v19_v0  }
  0x25   :  { %268 = vset.pattern.permute.xlu2 %v298_v10 }
  0x26   :  { %122 = vperm.xlu2 %268, %v18_v5  }
  0x2c   :  { %130 = vperm.xlu1 %267, %v20_v4  }
  0x5e   :  { %v58_v11 = vpop.permute.xlu2 %57 }
  0x66   :  { %v63_v12 = vpop.permute.xlu2 %62 }
  0x6f   :  { %v85_v15 = vpop.permute.xlu2 %84 }
  0x70   :  { %v101_v35 = vmul.f32 %v354_v23, %v85_v15  ;;  %v102_v38 = vmul.f32 %v356_v25, %v85_v15  ;;  %v187_v39 = vmul.f32 %v358_v26, %v85_v15  ;;  %v188_v40 = vmul.f32 %v360_v27, %v85_v15 }
  0x74   :  { %v38_v13 = vpop.permute.xlu1 %37  ;;  %v28_v14 = vpop.permute.xlu0 %27 }
  0x75   :  { %v47_v28 = vmul.f32 %v45_v20, %v28_v14  ;;  %v48_v29 = vmul.f32 %v46_v21, %v28_v14  ;;  %v169_v30 = vmul.f32 %v167_v22, %v28_v14  ;;  %v170_v32 = vmul.f32 %v168_v24, %v28_v14 }
  0x76   :  { %v51_v46 = vmul.f32 %v45_v20, %v38_v13  ;;  %v52_v47 = vmul.f32 %v46_v21, %v38_v13  ;;  %v173_v48 = vmul.f32 %v167_v22, %v38_v13  ;;  %v174_v54 = vmul.f32 %v168_v24, %v38_v13 }
  0x77   :  { %v97_v31 = vpop.permute.xlu2 %96  ;;  %v75_v42 = vadd.f32 %v58_v11, %v47_v28  ;;  %v76_v43 = vadd.f32 %v58_v11, %v48_v29  ;;  %v177_v44 = vadd.f32 %v169_v30, %v58_v11  ;;  %v178_v49 = vadd.f32 %v170_v32, %v58_v11 }
  0x78   :  { %v377_v55 = vmul.f32 %v354_v23, %v97_v31  ;;  %v380_v56 = vmul.f32 %v356_v25, %v97_v31  ;;  %v383_v57 = vmul.f32 %v358_v26, %v97_v31  ;;  %v392_v61 = vmul.f32 %v360_v27, %v97_v31 }
  0x79   :  { %v385_v58 = vadd.f32 %v101_v35, %v75_v42  ;;  %v387_v59 = vadd.f32 %v102_v38, %v76_v43  ;;  %v389_v60 = vadd.f32 %v187_v39, %v177_v44  ;;  %v196_v2 = vadd.f32 %v188_v40, %v178_v49 }
  0x7c   :  { %v346_v16 = vpop.permute.xlu1 %42  ;;  %v33_v17 = vpop.permute.xlu0 %32 }
  0x7d   :  { %v49_v50 = vmul.f32 %v45_v20, %v33_v17  ;;  %v50_v51 = vmul.f32 %v46_v21, %v33_v17  ;;  %v171_v52 = vmul.f32 %v167_v22, %v33_v17  ;;  %v172_v53 = vmul.f32 %v168_v24, %v33_v17 }
  0x7e   :  { %v53_v63 = vmul.f32 %v45_v20, %v346_v16  ;;  %v54_v0 = vmul.f32 %v46_v21, %v346_v16  ;;  %v175_v1 = vmul.f32 %v167_v22, %v346_v16 }
  0x7f   :  { %v77_v3 = vadd.f32 %v63_v12, %v49_v50  ;;  %v78_v4 = vadd.f32 %v63_v12, %v50_v51  ;;  %v179_v5 = vadd.f32 %v171_v52, %v63_v12  ;;  %v180_v6 = vadd.f32 %v172_v53, %v63_v12 }
  0x80   :  { %v123_v62 = vpop.permute.xlu2 %122  ;;  %v176_v12 = vmul.f32 %v168_v24, %v346_v16 }
  0x81   :  { %v137_v9 = vmul.f32 %v365_v36, %v123_v62  ;;  %v138_v10 = vmul.f32 %v367_v37, %v123_v62  ;;  %v207_v11 = vmul.f32 %v372_v41, %v123_v62  ;;  %v208_v13 = vmul.f32 %v374_v45, %v123_v62 }
  0x84   :  { %v73_v33 = vpop.permute.xlu1 %72  ;;  %v362_v34 = vpop.permute.xlu0 %67 }
  0x85   :  { %v81_v19 = vadd.f32 %v73_v33, %v53_v63  ;;  %v82_v20 = vadd.f32 %v73_v33, %v54_v0  ;;  %v183_v21 = vadd.f32 %v175_v1, %v73_v33  ;;  %v184_v31 = vadd.f32 %v176_v12, %v73_v33 }
  0x86   :  { %v79_v16 = vadd.f32 %v362_v34, %v51_v46  ;;  %v80_v24 = vadd.f32 %v362_v34, %v52_v47  ;;  %v181_v44 = vadd.f32 %v173_v48, %v362_v34  ;;  %v182_v49 = vadd.f32 %v174_v54, %v362_v34 }
  0x87   :  { %v115_v12 = vadd.f32 %v377_v55, %v81_v19 }
  0x8d   :  { %v93_v7 = vpop.permute.xlu1 %92  ;;  %v89_v8 = vpop.permute.xlu0 %88 }
  0x8e   :  { %v103_v14 = vmul.f32 %v354_v23, %v89_v8  ;;  %v104_v15 = vmul.f32 %v356_v25, %v89_v8  ;;  %v189_v17 = vmul.f32 %v358_v26, %v89_v8  ;;  %v190_v18 = vmul.f32 %v360_v27, %v89_v8 }
  0x8f   :  { %v105_v32 = vmul.f32 %v354_v23, %v93_v7  ;;  %v106_v35 = vmul.f32 %v356_v25, %v93_v7  ;;  %v191_v38 = vmul.f32 %v358_v26, %v93_v7  ;;  %v192_v33 = vmul.f32 %v360_v27, %v93_v7 }
  0x90   :  { %v111_v22 = vadd.f32 %v103_v14, %v77_v3  ;;  %v112_v28 = vadd.f32 %v104_v15, %v78_v4  ;;  %v197_v29 = vadd.f32 %v189_v17, %v179_v5  ;;  %v198_v30 = vadd.f32 %v190_v18, %v180_v6 }
  0x91   :  { %v113_v53 = vadd.f32 %v105_v32, %v79_v16  ;;  %v114_v62 = vadd.f32 %v106_v35, %v80_v24  ;;  %v199_v63 = vadd.f32 %v191_v38, %v181_v44 }
  0x92   :  { %v145_v39 = vadd.f32 %v137_v9, %v111_v22  ;;  %v146_v40 = vadd.f32 %v138_v10, %v112_v28  ;;  %v215_v42 = vadd.f32 %v207_v11, %v197_v29  ;;  %v216_v43 = vadd.f32 %v208_v13, %v198_v30 }
  0x93   :  { %v200_v9 = vadd.f32 %v192_v33, %v182_v49  ;;  %v201_v22 = vadd.f32 %v383_v57, %v183_v21  ;;  %v202_v28 = vadd.f32 %v392_v61, %v184_v31 }
  0x94   :  { %v153_v50 = vmax.f32 %v145_v39, 0.0  ;;  %v154_v23 = vmax.f32 %v146_v40, 0.0  ;;  %v223_v51 = vmax.f32 %v215_v42, 0.0  ;;  %v224_v25 = vmax.f32 %v216_v43, 0.0 }
  0x96   :  { %v119_v52 = vpop.permute.xlu1 %118  ;;  %v127_v26 = vpop.permute.xlu0 %126  ;;  %161 = vst [vmem:[#allocation2 + $0x10] sm:$0xff] %v153_v50 }
  0x97   :  { %v135_v46 = vmul.f32 %v365_v36, %v119_v52  ;;  %v136_v47 = vmul.f32 %v367_v37, %v119_v52  ;;  %v205_v48 = vmul.f32 %v372_v41, %v119_v52  ;;  %v206_v34 = vmul.f32 %v374_v45, %v119_v52  ;;  %162 = vst [vmem:[#allocation2 + $0x18] sm:$0xff] %v154_v23 }
  0x98   :  { %v139_v27 = vmul.f32 %v365_v36, %v127_v26  ;;  %v140_v54 = vmul.f32 %v367_v37, %v127_v26  ;;  %v209_v0 = vmul.f32 %v372_v41, %v127_v26  ;;  %v210_v1 = vmul.f32 %v374_v45, %v127_v26  ;;  %231 = vst [vmem:[#allocation2 + $0x50] sm:$0xff] %v223_v51 }
  0x99   :  { %v143_v3 = vadd.f32 %v135_v46, %v385_v58  ;;  %v144_v4 = vadd.f32 %v136_v47, %v387_v59  ;;  %v213_v5 = vadd.f32 %v205_v48, %v389_v60  ;;  %v214_v6 = vadd.f32 %v206_v34, %v196_v2  ;;  %232 = vst [vmem:[#allocation2 + $0x58] sm:$0xff] %v224_v25 }
  0x9a   :  { %v147_v7 = vadd.f32 %v139_v27, %v113_v53  ;;  %v148_v8 = vadd.f32 %v140_v54, %v114_v62  ;;  %v217_v10 = vadd.f32 %v209_v0, %v199_v63  ;;  %v218_v17 = vadd.f32 %v210_v1, %v200_v9 }
  0x9b   :  { %v151_v11 = vmax.f32 %v143_v3, 0.0  ;;  %v152_v13 = vmax.f32 %v144_v4, 0.0  ;;  %v221_v14 = vmax.f32 %v213_v5, 0.0  ;;  %v222_v15 = vmax.f32 %v214_v6, 0.0 }
  0x9c   :  { %v155_v18 = vmax.f32 %v147_v7, 0.0  ;;  %v116_v58 = vadd.f32 %v380_v56, %v82_v20  ;;  %v156_v59 = vmax.f32 %v148_v8, 0.0  ;;  %v225_v60 = vmax.f32 %v217_v10, 0.0 }
  0x9d   :  { %159 = vst [vmem:[#allocation2] sm:$0xff] %v151_v11  ;;  %v226_v55 = vmax.f32 %v218_v17, 0.0 }
  0x9e   :  { %160 = vst [vmem:[#allocation2 + $0x8] sm:$0xff] %v152_v13  ;;  %v131_v2 = vpop.permute.xlu1 %130 }
  0x9f   :  { %229 = vst [vmem:[#allocation2 + $0x40] sm:$0xff] %v221_v14  ;;  %v141_v29 = vmul.f32 %v365_v36, %v131_v2  ;;  %v142_v30 = vmul.f32 %v367_v37, %v131_v2  ;;  %v211_v32 = vmul.f32 %v372_v41, %v131_v2  ;;  %v212_v35 = vmul.f32 %v374_v45, %v131_v2 }
  0xa0   :  { %230 = vst [vmem:[#allocation2 + $0x48] sm:$0xff] %v222_v15 }
  0xa1   :  { %163 = vst [vmem:[#allocation2 + $0x20] sm:$0xff] %v155_v18  ;;  %v149_v56 = vadd.f32 %v141_v29, %v115_v12  ;;  %v150_v19 = vadd.f32 %v142_v30, %v116_v58  ;;  %v219_v20 = vadd.f32 %v211_v32, %v201_v22  ;;  %v220_v38 = vadd.f32 %v212_v35, %v202_v28 }
  0xa2   :  { %164 = vst [vmem:[#allocation2 + $0x28] sm:$0xff] %v156_v59 }
  0xa3   :  { %233 = vst [vmem:[#allocation2 + $0x60] sm:$0xff] %v225_v60  ;;  %v157_v36 = vmax.f32 %v149_v56, 0.0  ;;  %v158_v37 = vmax.f32 %v150_v19, 0.0  ;;  %v227_v41 = vmax.f32 %v219_v20, 0.0  ;;  %v228_v45 = vmax.f32 %v220_v38, 0.0 }
  0xa4   :  { %234 = vst [vmem:[#allocation2 + $0x68] sm:$0xff] %v226_v55 }
  0xa5   :  { %165 = vst [vmem:[#allocation2 + $0x30] sm:$0xff] %v157_v36 }
  0xa6   :  { %166 = vst [vmem:[#allocation2 + $0x38] sm:$0xff] %v158_v37 }
  0xa7   :  { %235 = vst [vmem:[#allocation2 + $0x70] sm:$0xff] %v227_v41 }
  0xa8   :  { %236 = vst [vmem:[#allocation2 + $0x78] sm:$0xff] %v228_v45 }
  0xa9   :  { %249 = dma.vmem_to_hbm [thread:$0]  %s242_s30, 2048, %s244_s6, [#allocation3], %s300_s7, %s300_s7, %s301_s8  }
  0xaa   :  { %294 = dma.done.wait [#allocation3], 2048  }
  0xab   :  { %295 = vsyncadd [#allocation3], 4294965248 }
  0xac   :  { %254 = vsyncpa [#allocation3], 1 }

</bundles_post_ra>
